<compile_context>
chip_gen: v6e
topology: v6e:2x2x1
jax: 0.10.0
libtpu: 0.0.40
codegen_flags: <defaults>
</compile_context>

<pallas_src>
import functools
import math

import jax
import jax.numpy as jnp
from jax.experimental import pallas as pl
from jax.experimental.pallas import tpu as pltpu

_BN_EPS = 1e-5


def _ceil_to(x, m):
    return ((x + m - 1) // m) * m


def _vmem_capacity_bytes():
    """Chip-aware VMEM capacity; conservative 64 MiB (v7x) fallback."""
    try:
        cap = int(pltpu.get_tpu_info().vmem_capacity_bytes)
        if cap > 0:
            return cap
    except Exception:
        pass
    return 64 * 1024 * 1024


# ---------------------------------------------------------------------------
# Pallas kernel 1: matmul with grid-invariant (VMEM-resident) weights
#                  + per-channel affine + optional residual + activation
# ---------------------------------------------------------------------------
def _mm_epilogue(acc, scale, shift, res, act, prelu_a):
    y = acc * scale + shift
    if res is not None:
        y = y + res
    if act == "relu":
        y = jnp.maximum(y, 0.0)
    elif act == "prelu":
        y = jnp.where(y > 0.0, y, prelu_a * y)
    elif act == "sigmoid":
        y = jax.nn.sigmoid(y)
    return y


def _fused_mm_kernel(x_ref, w_ref, scale_ref, shift_ref, o_ref, *, act, prelu_a):
    acc = jnp.dot(x_ref[...], w_ref[...], preferred_element_type=jnp.float32)
    y = _mm_epilogue(acc, scale_ref[...], shift_ref[...], None, act, prelu_a)
    o_ref[...] = y.astype(o_ref.dtype)


def _fused_mm_res_kernel(x_ref, w_ref, scale_ref, shift_ref, res_ref, o_ref,
                         *, act, prelu_a):
    acc = jnp.dot(x_ref[...], w_ref[...], preferred_element_type=jnp.float32)
    res = res_ref[...].astype(jnp.float32)
    y = _mm_epilogue(acc, scale_ref[...], shift_ref[...], res, act, prelu_a)
    o_ref[...] = y.astype(o_ref.dtype)


def fused_matmul(x, w, scale, shift, residual=None, act="none",
                 prelu_a=0.25, out_dtype=jnp.bfloat16):
    """act((x @ w) * scale + shift [+ residual]) -- (M,K)@(K,C), bf16 in / f32 acc.

    Single K step and single Cout tile: the (Kp, Cp) weight block is
    grid-invariant, so it is DMA'd into VMEM once; only M is tiled.
    """
    M, K = x.shape
    Kw, C = w.shape
    assert Kw == K

    Kp = _ceil_to(K, 128)          # K padded to 128 only
    Cp = _ceil_to(C, 128)          # <= 512 everywhere in this net: one N tile
    out_bytes = jnp.dtype(out_dtype).itemsize
    res_bytes = 2 if residual is not None else 0

    def footprint(tm):             # double-buffered tiles + resident weight
        return (2 * tm * Kp * 2            # x (bf16)
                + 2 * Kp * Cp * 2          # weight (2 buffers allocated)
                + 2 * 2 * Cp * 4           # scale + shift (f32)
                + 2 * tm * Cp * out_bytes  # output
                + 2 * tm * Cp * res_bytes)  # residual (bf16)

    cap = _vmem_capacity_bytes()
    budget = min(int(cap * 0.70), 100 * 1024 * 1024)
    m8 = max(8, _ceil_to(M, 8))
    tm = 8
    for cand in (1024, 512, 256, 128, 64, 32, 16, 8):
        if footprint(cand) <= budget:
            tm = cand
            break
    tm = min(tm, m8)
    Mp = _ceil_to(M, tm)

    xp = jnp.pad(x.astype(jnp.bfloat16), ((0, Mp - M), (0, Kp - K)))
    wp = jnp.pad(w.astype(jnp.bfloat16), ((0, Kp - K), (0, Cp - C)))
    sp = jnp.pad(scale.reshape(1, C).astype(jnp.float32), ((0, 0), (0, Cp - C)))
    bp = jnp.pad(shift.reshape(1, C).astype(jnp.float32), ((0, 0), (0, Cp - C)))

    in_specs = [
        pl.BlockSpec((tm, Kp), lambda i: (i, 0)),
        pl.BlockSpec((Kp, Cp), lambda i: (0, 0)),   # grid-invariant weight
        pl.BlockSpec((1, Cp), lambda i: (0, 0)),    # grid-invariant scale
        pl.BlockSpec((1, Cp), lambda i: (0, 0)),    # grid-invariant shift
    ]
    args = [xp, wp, sp, bp]
    if residual is not None:
        rp = jnp.pad(residual.astype(jnp.bfloat16), ((0, Mp - M), (0, Cp - C)))
        in_specs.append(pl.BlockSpec((tm, Cp), lambda i: (i, 0)))
        args.append(rp)
        kernel = functools.partial(_fused_mm_res_kernel, act=act, prelu_a=prelu_a)
    else:
        kernel = functools.partial(_fused_mm_kernel, act=act, prelu_a=prelu_a)

    vmem_limit = int(min(max(footprint(tm) + (4 << 20), 16 << 20),
                         min(int(cap * 0.9), 110 * 1024 * 1024)))

    out = pl.pallas_call(
        kernel,
        out_shape=jax.ShapeDtypeStruct((Mp, Cp), out_dtype),
        grid_spec=pltpu.PrefetchScalarGridSpec(
            num_scalar_prefetch=0,
            grid=(Mp // tm,),                       # M is the (only) parallel axis
            in_specs=in_specs,
            out_specs=pl.BlockSpec((tm, Cp), lambda i: (i, 0)),
        ),
        compiler_params=pltpu.CompilerParams(
            dimension_semantics=("parallel",),
            vmem_limit_bytes=vmem_limit,
        ),
    )(*args)
    return out[:M, :C]


# ---------------------------------------------------------------------------
# Convolution = im2col (bf16 glue) + fused Pallas matmul
# ---------------------------------------------------------------------------
def _im2col(x, KH, KW, stride, padding, dilation):
    N, H, W, C = x.shape
    xp = jnp.pad(x, ((0, 0), (padding, padding), (padding, padding), (0, 0)))
    Ho = (H + 2 * padding - dilation * (KH - 1) - 1) // stride + 1
    Wo = (W + 2 * padding - dilation * (KW - 1) - 1) // stride + 1
    cols = []
    for i in range(KH):
        for j in range(KW):
            hs = i * dilation
            ws = j * dilation
            patch = xp[:, hs:hs + (Ho - 1) * stride + 1:stride,
                          ws:ws + (Wo - 1) * stride + 1:stride, :]
            cols.append(patch)
    return jnp.concatenate(cols, axis=-1), Ho, Wo


def conv2d(x, wp, scale, shift, act="none", stride=1, padding=0, dilation=1,
           residual=None, prelu_a=0.25, out_dtype=jnp.bfloat16):
    """x: (N,H,W,Cin) ; wp: {'w': (KH*KW*Cin, Cout) bf16, 'kh','kw','cout'}."""
    N, H, W, Cin = x.shape
    kh, kw, cout = wp["kh"], wp["kw"], wp["cout"]
    x = x.astype(jnp.bfloat16)
    if kh == 1 and kw == 1 and padding == 0 and dilation == 1:
        if stride != 1:
            x = x[:, ::stride, ::stride, :]
        Ho, Wo = x.shape[1], x.shape[2]
        cols = x
    else:
        cols, Ho, Wo = _im2col(x, kh, kw, stride, padding, dilation)
    xm = cols.reshape(N * Ho * Wo, kh * kw * Cin)
    rm = None if residual is None else residual.reshape(N * Ho * Wo, cout)
    out = fused_matmul(xm, wp["w"], scale, shift, residual=rm, act=act,
                       prelu_a=prelu_a, out_dtype=out_dtype)
    return out.reshape(N, Ho, Wo, cout)


# ---------------------------------------------------------------------------
# Pallas kernel 2: max-pool 3x3 / stride 2 / pad 1
#   column-direction max fused in XLA (no 9x stack), row-direction max in
#   Pallas with a lane-dense (rows, Wo*C) layout.
# ---------------------------------------------------------------------------
def _max3_kernel(x_ref, o_ref):
    o_ref[...] = jnp.max(x_ref[...], axis=0)


def maxpool_3x3_s2_p1(x):
    N, H, W, C = x.shape
    pad, k, stride = 1, 3, 2
    Ho = (H + 2 * pad - k) // stride + 1
    Wo = (W + 2 * pad - k) // stride + 1
    xp = jnp.pad(x, ((0, 0), (pad, pad), (pad, pad), (0, 0)),
                 constant_values=-jnp.inf)

    cw = (Wo - 1) * stride + 1
    cm = jnp.maximum(
        jnp.maximum(xp[:, :, 0:cw:stride, :], xp[:, :, 1:1 + cw:stride, :]),
        xp[:, :, 2:2 + cw:stride, :])                 # (N, Hp, Wo, C), XLA-fused

    rh = (Ho - 1) * stride + 1
    taps = [cm[:, i:i + rh:stride, :, :] for i in range(3)]   # (N, Ho, Wo, C) each
    stacked = jnp.stack(taps, axis=0).reshape(3, N * Ho, Wo * C)

    M = N * Ho
    tm = min(512, _ceil_to(M, 8))
    Mp = _ceil_to(M, tm)
    if Mp != M:
        stacked = jnp.pad(stacked, ((0, 0), (0, Mp - M), (0, 0)))

    out = pl.pallas_call(
        _max3_kernel,
        out_shape=jax.ShapeDtypeStruct((Mp, Wo * C), x.dtype),
        grid_spec=pltpu.PrefetchScalarGridSpec(
            num_scalar_prefetch=0,
            grid=(Mp // tm,),
            in_specs=[pl.BlockSpec((3, tm, Wo * C), lambda i: (0, i, 0))],
            out_specs=pl.BlockSpec((tm, Wo * C), lambda i: (i, 0)),
        ),
        compiler_params=pltpu.CompilerParams(
            dimension_semantics=("parallel",)),
    )(stacked)
    return out[:M].reshape(N, Ho, Wo, C)


# ---------------------------------------------------------------------------
# Pallas kernel 3: bilinear x2 upsample (align_corners=False)
#   single interleaved output block (rows, 2, W, 2*C) so the final
#   (N, 2H, 2W, C) is a free contiguous reshape (no quad stack / transpose).
# ---------------------------------------------------------------------------
def _bilinear2x_kernel(u_ref, c_ref, d_ref, o_ref):
    Wd = o_ref.shape[2]
    Cc = o_ref.shape[3] // 2
    u = u_ref[...].astype(jnp.float32)
    c = c_ref[...].astype(jnp.float32)
    d = d_ref[...].astype(jnp.float32)
    # Column taps sliced in-kernel (inputs carry a 1-column halo each side).
    ul, uc, ur = u[:, 0:Wd], u[:, 1:Wd + 1], u[:, 2:Wd + 2]
    cl, cc, cr = c[:, 0:Wd], c[:, 1:Wd + 1], c[:, 2:Wd + 2]
    dl, dc, dr = d[:, 0:Wd], d[:, 1:Wd + 1], d[:, 2:Wd + 2]
    dt = o_ref.dtype
    # (row-phase, col-phase) quads written into the interleaved layout:
    # last dim = [col-phase 0 | col-phase 1] * C  (lane-aligned slices).
    o_ref[:, 0, :, 0:Cc] = (0.5625 * cc + 0.1875 * (uc + cl) + 0.0625 * ul).astype(dt)
    o_ref[:, 0, :, Cc:2 * Cc] = (0.5625 * cc + 0.1875 * (uc + cr) + 0.0625 * ur).astype(dt)
    o_ref[:, 1, :, 0:Cc] = (0.5625 * cc + 0.1875 * (dc + cl) + 0.0625 * dl).astype(dt)
    o_ref[:, 1, :, Cc:2 * Cc] = (0.5625 * cc + 0.1875 * (dc + cr) + 0.0625 * dr).astype(dt)


def bilinear_upsample_2x(x):
    N, H, W, C = x.shape
    xp = jnp.pad(x, ((0, 0), (1, 1), (1, 1), (0, 0)), mode="edge")
    # Three row-shifted copies (up / center / down), each with a column halo.
    # TODO(synk): a halo-row BlockSpec would cut this 3x input read to ~1x.
    u = xp[:, 0:H].reshape(N * H, W + 2, C)
    c = xp[:, 1:H + 1].reshape(N * H, W + 2, C)
    d = xp[:, 2:H + 2].reshape(N * H, W + 2, C)

    M = N * H
    itemsize = jnp.dtype(x.dtype).itemsize
    row_bytes = (3 * (W + 2) + 4 * W) * C * itemsize + 12 * (W + 2) * C * 4
    tr = int(max(8, min(256, (6 << 20) // max(row_bytes, 1))))
    tr = min(tr, _ceil_to(M, 8))
    Mp = _ceil_to(M, tr)
    if Mp != M:
        padrows = ((0, Mp - M), (0, 0), (0, 0))
        u = jnp.pad(u, padrows)
        c = jnp.pad(c, padrows)
        d = jnp.pad(d, padrows)

    in_spec = pl.BlockSpec((tr, W + 2, C), lambda i: (i, 0, 0))
    out = pl.pallas_call(
        _bilinear2x_kernel,
        out_shape=jax.ShapeDtypeStruct((Mp, 2, W, 2 * C), x.dtype),
        grid_spec=pltpu.PrefetchScalarGridSpec(
            num_scalar_prefetch=0,
            grid=(Mp // tr,),
            in_specs=[in_spec, in_spec, in_spec],
            out_specs=pl.BlockSpec((tr, 2, W, 2 * C), lambda i: (i, 0, 0, 0)),
        ),
        compiler_params=pltpu.CompilerParams(
            dimension_semantics=("parallel",)),
    )(u, c, d)
    # (rows, 2, W, 2C) is already in (n, h, row-phase, w, col-phase, c) memory
    # order, so the interleave to (N, 2H, 2W, C) is a free reshape.
    return out[:M].reshape(N, H, 2, W, 2, C).reshape(N, 2 * H, 2 * W, C)


# ---------------------------------------------------------------------------
# Parameters (deterministic, per the module's __init__)
# ---------------------------------------------------------------------------
def _conv_w(key, kh, kw, cin, cout):
    std = math.sqrt(2.0 / (kh * kw * cout))      # m.weight.normal_(0, sqrt(2/n))
    w = std * jax.random.normal(key, (kh, kw, cin, cout), jnp.float32)
    return {"w": w.reshape(kh * kw * cin, cout).astype(jnp.bfloat16),
            "kh": kh, "kw": kw, "cin": cin, "cout": cout}


def _bn(c):
    # Inference-mode BN folded to scale/shift (gamma=1, beta=0, mean=0, var=1).
    scale = jnp.full((c,), 1.0 / math.sqrt(1.0 + _BN_EPS), jnp.float32)
    shift = jnp.zeros((c,), jnp.float32)
    return scale, shift


def make_params(key, input_channel=3, layers=(3, 4, 23, 3)):
    ki = iter(jax.random.split(key, 128))
    P = {}
    P["conv1"] = _conv_w(next(ki), 7, 7, input_channel, 64)
    P["bn1"] = _bn(64)

    inplanes = 64

    def make_layer(planes, blocks, dilation):
        nonlocal inplanes
        layer = []
        for b in range(blocks):
            blk = {"stride": 1, "dilation": 1 if b == 0 else dilation}
            cin = inplanes if b == 0 else planes
            blk["conv1"] = _conv_w(next(ki), 3, 3, cin, planes)
            blk["bn1"] = _bn(planes)
            blk["conv2"] = _conv_w(next(ki), 3, 3, planes, planes)
            blk["bn2"] = _bn(planes)
            if b == 0 and inplanes != planes:
                blk["ds"] = _conv_w(next(ki), 1, 1, inplanes, planes)
                blk["ds_bn"] = _bn(planes)
            layer.append(blk)
        inplanes = planes
        return layer

    P["layer1"] = make_layer(64, layers[0], 2)
    P["layer2"] = make_layer(128, layers[1], 2)

    P["fo1"] = _conv_w(next(ki), 3, 3, 128, 512)
    P["fo1_bn"] = _bn(512)
    P["fo2"] = _conv_w(next(ki), 3, 3, 512, 512)
    P["fo2_bn"] = _bn(512)

    def upsample_params(cin, cout):
        w = _conv_w(next(ki), 3, 3, cin, cout)
        bound = 1.0 / math.sqrt(cin * 9)          # PyTorch default conv bias init
        bias = jax.random.uniform(next(ki), (cout,), jnp.float32, -bound, bound)
        s, b0 = _bn(cout)
        # BN after conv+bias: y = scale*conv(x) + (shift + scale*bias)
        return {"conv": w, "scale": s, "shift": b0 + s * bias, "prelu_a": 0.25}

    P["up1"] = upsample_params(512, 256)
    P["up2"] = upsample_params(256, 128)
    P["final"] = _conv_w(next(ki), 1, 1, 128, 1)   # bias=False per the module
    return P


# ---------------------------------------------------------------------------
# Forward pass
# ---------------------------------------------------------------------------
def _basic_block(x, blk):
    dil = blk["dilation"]
    stride = blk["stride"]
    out = conv2d(x, blk["conv1"], blk["bn1"][0], blk["bn1"][1],
                 act="relu", stride=stride, padding=dil, dilation=dil)
    if "ds" in blk:
        residual = conv2d(x, blk["ds"], blk["ds_bn"][0], blk["ds_bn"][1],
                          act="none", stride=stride, padding=0, dilation=1)
    else:
        residual = x
    # conv2 + BN + residual add + ReLU all fused in the matmul epilogue.
    return conv2d(out, blk["conv2"], blk["bn2"][0], blk["bn2"][1],
                  act="relu", stride=1, padding=dil, dilation=dil,
                  residual=residual)


def resnet_half_forward(x_nchw, P):
    x = jnp.transpose(x_nchw, (0, 2, 3, 1)).astype(jnp.float32)  # NCHW -> NHWC
    # stem
    x = conv2d(x, P["conv1"], P["bn1"][0], P["bn1"][1],
               act="relu", stride=2, padding=3)
    x = maxpool_3x3_s2_p1(x)
    # residual stages
    for blk in P["layer1"]:
        x = _basic_block(x, blk)
    for blk in P["layer2"]:
        x = _basic_block(x, blk)
    # convforeout
    x = conv2d(x, P["fo1"], P["fo1_bn"][0], P["fo1_bn"][1], act="relu", padding=1)
    x = conv2d(x, P["fo2"], P["fo2_bn"][0], P["fo2_bn"][1], act="relu", padding=1)
    x = bilinear_upsample_2x(x)
    x = conv2d(x, P["up1"]["conv"], P["up1"]["scale"], P["up1"]["shift"],
               act="prelu", padding=1, prelu_a=P["up1"]["prelu_a"])
    x = bilinear_upsample_2x(x)
    x = conv2d(x, P["up2"]["conv"], P["up2"]["scale"], P["up2"]["shift"],
               act="prelu", padding=1, prelu_a=P["up2"]["prelu_a"])
    # final 1x1 conv (bias-free) + sigmoid, fused in one kernel, f32 output
    x = conv2d(x, P["final"], jnp.ones((1,), jnp.float32),
               jnp.zeros((1,), jnp.float32), act="sigmoid", padding=0,
               out_dtype=jnp.float32)
    return jnp.transpose(x, (0, 3, 1, 2))  # NHWC -> NCHW


if __name__ == "__main__":
    key = jax.random.PRNGKey(0)
    kx, kp = jax.random.split(key)
    x = jax.random.normal(kx, (2, 3, 16, 16), jnp.float32)  # NCHW like PyTorch
    params = make_params(kp, input_channel=3, layers=(3, 4, 23, 3))
    out = resnet_half_forward(x, params)
    out = jax.block_until_ready(out)
    assert out.shape == (2, 1, 16, 16), out.shape
    assert bool(jnp.all(jnp.isfinite(out)))
    assert bool(jnp.all((out >= 0.0) & (out <= 1.0)))
    print("KERNEL_OK")
</pallas_src>

<mosaic_0001>
module attributes {stable_mosaic.version = 11 : i64} {
  func.func @_fused_mm_kernel(%arg0: i32, %arg1: memref<128x256xbf16, #tpu.memory_space<vmem>>, %arg2: memref<256x128xbf16, #tpu.memory_space<vmem>>, %arg3: memref<1x128xf32, #tpu.memory_space<vmem>>, %arg4: memref<1x128xf32, #tpu.memory_space<vmem>>, %arg5: memref<128x128xbf16, #tpu.memory_space<vmem>>) attributes {dimension_semantics = [#tpu.dimension_semantics<parallel>], iteration_bounds = array<i64: 1>, scalar_prefetch = 0 : i64, scratch_operands = 0 : i64, tpu.core_type = #tpu.core_type<tc>, window_params = [{transform_indices = @transform_0, window_bounds = array<i64: 128, 256>}, {pipeline_mode = #tpu.pipeline_mode<synchronous>, transform_indices = @transform_1, window_bounds = array<i64: 256, 128>}, {pipeline_mode = #tpu.pipeline_mode<synchronous>, transform_indices = @transform_2, window_bounds = array<i64: 1, 128>}, {pipeline_mode = #tpu.pipeline_mode<synchronous>, transform_indices = @transform_3, window_bounds = array<i64: 1, 128>}, {transform_indices = @transform_4, window_bounds = array<i64: 128, 128>}]} {
    %c0 = arith.constant 0 : index
    %c0_0 = arith.constant 0 : index
    %0 = vector.load %arg1[%c0, %c0_0] : memref<128x256xbf16, #tpu.memory_space<vmem>>, vector<128x256xbf16>
    %c0_1 = arith.constant 0 : index
    %c0_2 = arith.constant 0 : index
    %1 = vector.load %arg2[%c0_1, %c0_2] : memref<256x128xbf16, #tpu.memory_space<vmem>>, vector<256x128xbf16>
    %cst = arith.constant dense<0.000000e+00> : vector<128x128xf32>
    %2 = tpu.matmul %0, %1, %cst {dimension_numbers = #tpu.dot_dimension_numbers<[1], [0], [0], [1], [0, 0, 1, 1], [], []>} : vector<128x256xbf16>, vector<256x128xbf16>, vector<128x128xf32> -> vector<128x128xf32>
    %c0_3 = arith.constant 0 : index
    %c0_4 = arith.constant 0 : index
    %3 = vector.load %arg3[%c0_3, %c0_4] : memref<1x128xf32, #tpu.memory_space<vmem>>, vector<1x128xf32>
    %c0_5 = arith.constant 0 : index
    %c0_6 = arith.constant 0 : index
    %4 = vector.load %arg4[%c0_5, %c0_6] : memref<1x128xf32, #tpu.memory_space<vmem>>, vector<1x128xf32>
    %5 = vector.broadcast %3 : vector<1x128xf32> to vector<128x128xf32>
    %6 = arith.mulf %2, %5 : vector<128x128xf32>
    %7 = vector.broadcast %4 : vector<1x128xf32> to vector<128x128xf32>
    %8 = arith.addf %6, %7 : vector<128x128xf32>
    %cst_7 = arith.constant 0.000000e+00 : f32
    %9 = vector.broadcast %cst_7 : f32 to vector<128x128xf32>
    %10 = arith.maximumf %8, %9 : vector<128x128xf32>
    %11 = arith.truncf %10 : vector<128x128xf32> to vector<128x128xbf16>
    %c0_8 = arith.constant 0 : index
    %c0_9 = arith.constant 0 : index
    %12 = vector.load %arg5[%c0_8, %c0_9] : memref<128x128xbf16, #tpu.memory_space<vmem>>, vector<128x128xbf16>
    tpu.vector_store %arg5[%c0_8, %c0_9], %11 {strides = array<i32>} : memref<128x128xbf16, #tpu.memory_space<vmem>>, vector<128x128xbf16>,
    return
  }
  func.func @transform_0(%arg0: i32) -> (i32, i32) {
    %c0_i32 = arith.constant 0 : i32
    %c0_i32_0 = arith.constant 0 : i32
    return %arg0, %c0_i32 : i32, i32
  }
  func.func @transform_1(%arg0: i32) -> (i32, i32) {
    %c0_i32 = arith.constant 0 : i32
    %c0_i32_0 = arith.constant 0 : i32
    %c0_i32_1 = arith.constant 0 : i32
    return %c0_i32, %c0_i32_0 : i32, i32
  }
  func.func @transform_2(%arg0: i32) -> (i32, i32) {
    %c0_i32 = arith.constant 0 : i32
    %c0_i32_0 = arith.constant 0 : i32
    %c0_i32_1 = arith.constant 0 : i32
    return %c0_i32, %c0_i32_0 : i32, i32
  }
  func.func @transform_3(%arg0: i32) -> (i32, i32) {
    %c0_i32 = arith.constant 0 : i32
    %c0_i32_0 = arith.constant 0 : i32
    %c0_i32_1 = arith.constant 0 : i32
    return %c0_i32, %c0_i32_0 : i32, i32
  }
  func.func @transform_4(%arg0: i32) -> (i32, i32) {
    %c0_i32 = arith.constant 0 : i32
    %c0_i32_0 = arith.constant 0 : i32
    return %arg0, %c0_i32 : i32, i32
  }
}

</mosaic_0001>

<bundles_post_ra>
// kernel: tpu_custom_call.1
= control target key start
LH: loop header
LB: loop body
LE: loop exit
PB: predicated region body
PF: predicated region fallthrough
CT: control target
= control target key end

     0   :  { %9 = vsyncpa [#allocation3], 0  ;;  %s923_s0 = inlined_call_operand.hbm [shape: bf16[128,256], index: 0, kind: input, shape index: {}]   ;;  %s924_s1 = inlined_call_operand.hbm [shape: bf16[256,128], index: 1, kind: input, shape index: {}]   ;;  %s925_s2 = inlined_call_operand.vmem [shape: f32[1,128], index: 2, kind: input, shape index: {}]   ;;  %s926_s3 = inlined_call_operand.vmem [shape: f32[1,128], index: 3, kind: input, shape index: {}]   ;;  %s927_s4 = inlined_call_operand.hbm [shape: bf16[128,128], index: 4, kind: output, shape index: {}]  }
   0x1   :  { %10 = vsyncpa [#allocation6], 0 }
   0x2   :  { %11 = vsyncpa [#allocation4], 0  ;;  %s834_s15 = smov [#allocation2]  }
   0x3   :  { %s17_s16 = sshll.u32 %s834_s15, 4  ;;  %s18_s16 = int_to_ptr.vmem [resolvable:$true] %s17_s16 }
   0x4   :  { %s776_s17 = scalar_lea.vmem %s18_s16, 2048  ;;  %p781_p1 = scmp.lt.s32.totalorder %s18_s16, %s18_s16 }
   0x5   :  { %p777_p0 = scmp.ne.s32.totalorder %s18_s16, %s776_s17  ;;  %p782_p2 = scmp.lt.s32.totalorder %s776_s17, %s776_s17 }
   0x7   :  { %p783_p3 = por %p782_p2, %p781_p1 }
   0x9   :  { %p784_p4 = pnand %p783_p3, %p777_p0 }
   0xb   :  { %787 = shalt.err (!%p784_p4)
}
   0xc   :  { %s835_s18 = smov 128   ;;  %s836_s19 = smov 8  }
   0xd   :  { %23 = dma.hbm_to_vmem [thread:$0]  %s923_s0, 2048, %s18_s16, [#allocation3], %s835_s18, %s835_s18, %s836_s19  }
   0xe   :  { %s837_s22 = smov [#allocation5]  }
   0xf   :  { %s29_s23 = sshll.u32 %s837_s22, 4  ;;  %s30_s23 = int_to_ptr.vmem [resolvable:$true] %s29_s23 }
  0x10   :  { %s796_s24 = scalar_lea.vmem %s30_s23, 2048  ;;  %p801_p6 = scmp.lt.s32.totalorder %s30_s23, %s30_s23 }
  0x11   :  { %p797_p5 = scmp.ne.s32.totalorder %s30_s23, %s796_s24  ;;  %p802_p7 = scmp.lt.s32.totalorder %s796_s24, %s796_s24 }
  0x13   :  { %p803_p8 = por %p802_p7, %p801_p6 }
  0x15   :  { %p804_p9 = pnand %p803_p8, %p797_p5 }
  0x17   :  { %807 = shalt.err (!%p804_p9)
}
  0x18   :  { %s838_s25 = smov 64   ;;  %s839_s26 = smov 4  }
  0x19   :  { %35 = dma.hbm_to_vmem [thread:$0]  %s924_s1, 2048, %s30_s23, [#allocation6], %s838_s25, %s838_s25, %s839_s26  }
  0x1a   :  { %828 = dma.done.wait [#allocation3], 2048  }
  0x1b   :  { %829 = vsyncadd [#allocation3], 4294965248 }
  0x1c   :  { %830 = dma.done.wait [#allocation6], 2048  }
  0x1d   :  { %831 = vsyncadd [#allocation6], 4294965248  ;;  %v728_v0 = vld [vmem:[#allocation5 + $0x78] sm:$0xff]   ;;  %v730_v2 = vld [vmem:[#allocation5 + $0x70] sm:$0xff]  }
  0x1e   :  { %v729_v1 = vld [vmem:[#allocation5 + $0x38] sm:$0xff]   ;;  %641 = vmatprep.subr.bf16.mxu0 %v728_v0  ;;  %705 = vmatprep.subr.bf16.mxu1 %v728_v0  ;;  %v731_v3 = vld [vmem:[#allocation5 + $0x30] sm:$0xff]   ;;  %v732_v4 = vld [vmem:[#allocation5 + $0x68] sm:$0xff]  }
  0x1f   :  { %642 = vmatpush3.bf16.msra.mxu0 %v729_v1  ;;  %713 = vmatpush3.bf16.msra.mxu1 %v729_v1  ;;  %v733_v5 = vld [vmem:[#allocation5 + $0x28] sm:$0xff]   ;;  %v734_v6 = vld [vmem:[#allocation5 + $0x60] sm:$0xff]   ;;  %v736_v8 = vld [vmem:[#allocation5 + $0x58] sm:$0xff]  }
  0x20   :  { %643 = vmatprep.subr.bf16.mxu0 %v730_v2  ;;  %706 = vmatprep.subr.bf16.mxu1 %v730_v2  ;;  %v735_v7 = vld [vmem:[#allocation5 + $0x20] sm:$0xff]   ;;  %v737_v9 = vld [vmem:[#allocation5 + $0x18] sm:$0xff]   ;;  %v738_v10 = vld [vmem:[#allocation5 + $0x50] sm:$0xff]  }
  0x21   :  { %v746_v11 = vld [vmem:[#allocation2 + $0x4] ss:$8 sps:$4 sm:$0xff]   ;;  %v739_v13 = vld [vmem:[#allocation5 + $0x10] sm:$0xff]   ;;  %v744_v18 = vld [vmem:[#allocation2] ss:$8 sps:$4 sm:$0xff]  }
  0x22   :  { %v749_v12 = vld [vmem:[#allocation2 + $0x44] ss:$8 sps:$4 sm:$0xff]   ;;  %303 = vmatprep.mubr.bf16.mxu0 %v746_v11  ;;  %v747_v19 = vld [vmem:[#allocation2 + $0x40] ss:$8 sps:$4 sm:$0xff]   ;;  %v750_v20 = vld [vmem:[#allocation2 + $0x14] ss:$8 sps:$4 sm:$0xff]  }
  0x23   :  { %644 = vmatpush3.bf16.msra.mxu0 %v731_v3  ;;  %714 = vmatpush3.bf16.msra.mxu1 %v731_v3  ;;  %v740_v14 = vld [vmem:[#allocation5 + $0x48] sm:$0xff]   ;;  %v742_v16 = vld [vmem:[#allocation5 + $0x40] sm:$0xff]   ;;  %v752_v21 = vld [vmem:[#allocation2 + $0x54] ss:$8 sps:$4 sm:$0xff]  }
  0x24   :  { %645 = vmatprep.subr.bf16.mxu0 %v732_v4  ;;  %707 = vmatprep.subr.bf16.mxu1 %v732_v4  ;;  %v741_v15 = vld [vmem:[#allocation5 + $0x8] sm:$0xff]   ;;  %v743_v17 = vld [vmem:[#allocation5] sm:$0xff]   ;;  %v754_v22 = vld [vmem:[#allocation2 + $0x10] ss:$8 sps:$4 sm:$0xff]  }
  0x25   :  { %335 = vmatprep.mubr.bf16.mxu1 %v749_v12  ;;  %v755_v23 = vld [vmem:[#allocation2 + $0x50] ss:$8 sps:$4 sm:$0xff]   ;;  %v756_v24 = vld [vmem:[#allocation2 + $0x24] ss:$8 sps:$4 sm:$0xff]   ;;  %v760_v26 = vld [vmem:[#allocation2 + $0x20] ss:$8 sps:$4 sm:$0xff]  }
  0x26   :  { %v758_v25 = vld [vmem:[#allocation2 + $0x64] ss:$8 sps:$4 sm:$0xff]   ;;  %v761_v27 = vld [vmem:[#allocation2 + $0x60] ss:$8 sps:$4 sm:$0xff]   ;;  %v762_v28 = vld [vmem:[#allocation2 + $0x34] ss:$8 sps:$4 sm:$0xff]  }
  0x27   :  { %646 = vmatpush3.bf16.msra.mxu0 %v733_v5  ;;  %715 = vmatpush3.bf16.msra.mxu1 %v733_v5  ;;  %v764_v29 = vld [vmem:[#allocation2 + $0x74] ss:$8 sps:$4 sm:$0xff]   ;;  %v766_v30 = vld [vmem:[#allocation2 + $0x30] ss:$8 sps:$4 sm:$0xff]   ;;  %v878_v35 = vld [vmem:[%s925_s2] ss:$0 sm:$0xff] }
  0x28   :  { %647 = vmatprep.subr.bf16.mxu0 %v734_v6  ;;  %708 = vmatprep.subr.bf16.mxu1 %v734_v6  ;;  %v767_v31 = vld [vmem:[#allocation2 + $0x70] ss:$8 sps:$4 sm:$0xff]   ;;  %v885_v43 = vld [vmem:[%s926_s3] ss:$0 sm:$0xff]  ;;  %s840_s2 = smov [#allocation7]  }
  0x29   :  { %s515_s3 = sshll.u32 %s840_s2, 4  ;;  %s516_s3 = int_to_ptr.vmem [resolvable:$true] %s515_s3 }
  0x2a   :  { %s808_s5 = scalar_lea.vmem %s516_s3, 1024  ;;  %p813_p11 = scmp.lt.s32.totalorder %s516_s3, %s516_s3 }
  0x2b   :  { %648 = vmatpush3.bf16.msra.mxu0 %v735_v7  ;;  %716 = vmatpush3.bf16.msra.mxu1 %v735_v7  ;;  %p809_p10 = scmp.ne.s32.totalorder %s516_s3, %s808_s5  ;;  %p814_p12 = scmp.lt.s32.totalorder %s808_s5, %s808_s5 }
  0x2c   :  { %649 = vmatprep.subr.bf16.mxu0 %v736_v8  ;;  %709 = vmatprep.subr.bf16.mxu1 %v736_v8 }
  0x2d   :  { %p815_p13 = por %p814_p12, %p813_p11 }
  0x2f   :  { %650 = vmatpush3.bf16.msra.mxu0 %v737_v9  ;;  %717 = vmatpush3.bf16.msra.mxu1 %v737_v9  ;;  %p816_p0 = pnand %p815_p13, %p809_p10 }
  0x30   :  { %651 = vmatprep.subr.bf16.mxu0 %v738_v10  ;;  %710 = vmatprep.subr.bf16.mxu1 %v738_v10 }
  0x33   :  { %652 = vmatpush3.bf16.msra.mxu0 %v739_v13  ;;  %718 = vmatpush3.bf16.msra.mxu1 %v739_v13 }
  0x34   :  { %653 = vmatprep.subr.bf16.mxu0 %v740_v14  ;;  %711 = vmatprep.subr.bf16.mxu1 %v740_v14 }
  0x37   :  { %654 = vmatpush3.bf16.msra.mxu0 %v741_v15  ;;  %719 = vmatpush3.bf16.msra.mxu1 %v741_v15 }
  0x38   :  { %655 = vmatprep.subr.bf16.mxu0 %v742_v16  ;;  %712 = vmatprep.subr.bf16.mxu1 %v742_v16 }
  0x3b   :  { %656 = vmatpush3.bf16.msra.mxu0 %v743_v17  ;;  %720 = vmatpush3.bf16.msra.mxu1 %v743_v17 }
  0x3e   :  { %304 = vmatmul.mubr.bf16.vlgmr.msra.gmra.mxu0 %v744_v18  ;;  %336 = vmatmul.mubr.bf16.vlgmr.msra.gmra.mxu1 %v747_v19 }
  0x3f   :  { %311 = vmatprep.mubr.bf16.mxu0 %v750_v20  ;;  %343 = vmatprep.mubr.bf16.mxu1 %v752_v21 }
  0x46   :  { %312 = vmatmul.mubr.bf16.gmra.mxu0 %v754_v22  ;;  %344 = vmatmul.mubr.bf16.gmra.mxu1 %v755_v23 }
  0x47   :  { %319 = vmatprep.mubr.bf16.mxu0 %v756_v24  ;;  %351 = vmatprep.mubr.bf16.mxu1 %v758_v25 }
  0x4e   :  { %320 = vmatmul.mubr.bf16.gmra.mxu0 %v760_v26  ;;  %352 = vmatmul.mubr.bf16.gmra.mxu1 %v761_v27 }
  0x4f   :  { %327 = vmatprep.mubr.bf16.mxu0 %v762_v28  ;;  %359 = vmatprep.mubr.bf16.mxu1 %v764_v29 }
  0x56   :  { %328 = vmatmul.mubr.bf16.gmra.mxu0 %v766_v30  ;;  %360 = vmatmul.mubr.bf16.gmra.mxu1 %v767_v31 }
  0xfe   :  { %v657_v32 = vpop.f32.mrf.mxu0  ;;  %v681_v33 = vpop.f32.mrf.mxu1 }
 0x100   :  { %v658_v34 = vpop.f32.mrf.mxu0  ;;  %v682_v36 = vpop.f32.mrf.mxu1 }
 0x101   :  { %v659_v37 = vadd.f32 %v658_v34, %v657_v32  ;;  %v683_v38 = vadd.f32 %v682_v36, %v681_v33 }
 0x102   :  { %v660_v39 = vpop.f32.mrf.mxu0  ;;  %v684_v40 = vpop.f32.mrf.mxu1 }
 0x103   :  { %v376_v41 = vmul.f32 %v659_v37, %v878_v35  ;;  %v384_v42 = vmul.f32 %v683_v38, %v878_v35 }
 0x104   :  { %v661_v44 = vpop.f32.mrf.mxu0  ;;  %v685_v45 = vpop.f32.mrf.mxu1 }
 0x105   :  { %v662_v46 = vadd.f32 %v661_v44, %v660_v39  ;;  %v686_v47 = vadd.f32 %v685_v45, %v684_v40  ;;  %v398_v50 = vadd.f32 %v885_v43, %v376_v41  ;;  %v406_v51 = vadd.f32 %v885_v43, %v384_v42 }
 0x106   :  { %v663_v48 = vpop.f32.mrf.mxu0  ;;  %v687_v49 = vpop.f32.mrf.mxu1 }
 0x107   :  { %v377_v52 = vmul.f32 %v662_v46, %v878_v35  ;;  %v385_v53 = vmul.f32 %v686_v47, %v878_v35  ;;  %v414_v62 = vmax.f32 %v398_v50, 0.0  ;;  %v422_v63 = vmax.f32 %v406_v51, 0.0 }
 0x108   :  { %v664_v54 = vpop.f32.mrf.mxu0  ;;  %v688_v55 = vpop.f32.mrf.mxu1 }
 0x109   :  { %v399_v56 = vadd.f32 %v885_v43, %v377_v52  ;;  %v407_v57 = vadd.f32 %v885_v43, %v385_v53  ;;  %v665_v58 = vadd.f32 %v664_v54, %v663_v48  ;;  %v689_v59 = vadd.f32 %v688_v55, %v687_v49 }
 0x10a   :  { %v666_v60 = vpop.f32.mrf.mxu0  ;;  %v690_v61 = vpop.f32.mrf.mxu1 }
 0x10b   :  { %v415_v0 = vmax.f32 %v399_v56, 0.0  ;;  %v423_v1 = vmax.f32 %v407_v57, 0.0  ;;  %v378_v2 = vmul.f32 %v665_v58, %v878_v35  ;;  %v386_v3 = vmul.f32 %v689_v59, %v878_v35 }
 0x10c   :  { %v667_v4 = vpop.f32.mrf.mxu0  ;;  %v691_v5 = vpop.f32.mrf.mxu1 }
 0x10d   :  { %v597_v6 = vpack.c.bf16 %v415_v0, %v414_v62  ;;  %v617_v7 = vpack.c.bf16 %v423_v1, %v422_v63  ;;  %v668_v8 = vadd.f32 %v667_v4, %v666_v60  ;;  %v692_v9 = vadd.f32 %v691_v5, %v690_v61 }
 0x10e   :  { %v669_v10 = vpop.f32.mrf.mxu0  ;;  %v693_v11 = vpop.f32.mrf.mxu1  ;;  %v400_v12 = vadd.f32 %v885_v43, %v378_v2  ;;  %v408_v13 = vadd.f32 %v885_v43, %v386_v3 }
 0x10f   :  { %598 = vst [vmem:[#allocation7] sm:$0xff] %v597_v6   ;;  %637 = vst [vmem:[#allocation7 + $0x20] sm:$0xff] %v617_v7   ;;  %v379_v14 = vmul.f32 %v668_v8, %v878_v35  ;;  %v387_v15 = vmul.f32 %v692_v9, %v878_v35 }
 0x110   :  { %v670_v16 = vpop.f32.mrf.mxu0  ;;  %v694_v17 = vpop.f32.mrf.mxu1  ;;  %v416_v26 = vmax.f32 %v400_v12, 0.0  ;;  %v424_v27 = vmax.f32 %v408_v13, 0.0 }
 0x111   :  { %v671_v18 = vadd.f32 %v670_v16, %v669_v10  ;;  %v695_v19 = vadd.f32 %v694_v17, %v693_v11  ;;  %v401_v20 = vadd.f32 %v885_v43, %v379_v14  ;;  %v409_v21 = vadd.f32 %v885_v43, %v387_v15 }
 0x112   :  { %v672_v22 = vpop.f32.mrf.mxu0  ;;  %v696_v23 = vpop.f32.mrf.mxu1 }
 0x113   :  { %v380_v24 = vmul.f32 %v671_v18, %v878_v35  ;;  %v388_v25 = vmul.f32 %v695_v19, %v878_v35  ;;  %v417_v28 = vmax.f32 %v401_v20, 0.0  ;;  %v425_v29 = vmax.f32 %v409_v21, 0.0 }
 0x114   :  { %v673_v30 = vpop.f32.mrf.mxu0  ;;  %v697_v31 = vpop.f32.mrf.mxu1 }
 0x115   :  { %v674_v32 = vadd.f32 %v673_v30, %v672_v22  ;;  %v698_v33 = vadd.f32 %v697_v31, %v696_v23  ;;  %v602_v34 = vpack.c.bf16 %v417_v28, %v416_v26  ;;  %v622_v36 = vpack.c.bf16 %v425_v29, %v424_v27 }
 0x116   :  { %v675_v37 = vpop.f32.mrf.mxu0  ;;  %v699_v38 = vpop.f32.mrf.mxu1  ;;  %v402_v39 = vadd.f32 %v885_v43, %v380_v24  ;;  %v410_v40 = vadd.f32 %v885_v43, %v388_v25 }
 0x117   :  { %v381_v41 = vmul.f32 %v674_v32, %v878_v35  ;;  %v389_v42 = vmul.f32 %v698_v33, %v878_v35  ;;  %634 = vst [vmem:[#allocation7 + $0x8] sm:$0xff] %v602_v34   ;;  %638 = vst [vmem:[#allocation7 + $0x28] sm:$0xff] %v622_v36  }
 0x118   :  { %v676_v44 = vpop.f32.mrf.mxu0  ;;  %v700_v45 = vpop.f32.mrf.mxu1  ;;  %v418_v52 = vmax.f32 %v402_v39, 0.0  ;;  %v426_v53 = vmax.f32 %v410_v40, 0.0 }
 0x119   :  { %v403_v46 = vadd.f32 %v885_v43, %v381_v41  ;;  %v411_v47 = vadd.f32 %v885_v43, %v389_v42  ;;  %v677_v48 = vadd.f32 %v676_v44, %v675_v37  ;;  %v701_v49 = vadd.f32 %v700_v45, %v699_v38 }
 0x11a   :  { %v678_v50 = vpop.f32.mrf.mxu0  ;;  %v702_v51 = vpop.f32.mrf.mxu1 }
 0x11b   :  { %v419_v54 = vmax.f32 %v403_v46, 0.0  ;;  %v427_v55 = vmax.f32 %v411_v47, 0.0  ;;  %v382_v56 = vmul.f32 %v677_v48, %v878_v35  ;;  %v390_v57 = vmul.f32 %v701_v49, %v878_v35 }
 0x11c   :  { %v679_v58 = vpop.f32.mrf.mxu0  ;;  %v703_v59 = vpop.f32.mrf.mxu1 }
 0x11d   :  { %v607_v60 = vpack.c.bf16 %v419_v54, %v418_v52  ;;  %v627_v61 = vpack.c.bf16 %v427_v55, %v426_v53  ;;  %v680_v62 = vadd.f32 %v679_v58, %v678_v50  ;;  %v704_v63 = vadd.f32 %v703_v59, %v702_v51 }
 0x11e   :  { %v404_v0 = vadd.f32 %v885_v43, %v382_v56  ;;  %v412_v1 = vadd.f32 %v885_v43, %v390_v57 }
 0x11f   :  { %635 = vst [vmem:[#allocation7 + $0x10] sm:$0xff] %v607_v60   ;;  %639 = vst [vmem:[#allocation7 + $0x30] sm:$0xff] %v627_v61   ;;  %v383_v2 = vmul.f32 %v680_v62, %v878_v35  ;;  %v391_v3 = vmul.f32 %v704_v63, %v878_v35 }
 0x120   :  { %v420_v6 = vmax.f32 %v404_v0, 0.0  ;;  %v428_v7 = vmax.f32 %v412_v1, 0.0 }
 0x121   :  { %v405_v4 = vadd.f32 %v885_v43, %v383_v2  ;;  %v413_v5 = vadd.f32 %v885_v43, %v391_v3 }
 0x123   :  { %v421_v8 = vmax.f32 %v405_v4, 0.0  ;;  %v429_v9 = vmax.f32 %v413_v5, 0.0 }
 0x125   :  { %v612_v10 = vpack.c.bf16 %v421_v8, %v420_v6  ;;  %v632_v11 = vpack.c.bf16 %v429_v9, %v428_v7 }
 0x127   :  { %636 = vst [vmem:[#allocation7 + $0x18] sm:$0xff] %v612_v10   ;;  %640 = vst [vmem:[#allocation7 + $0x38] sm:$0xff] %v632_v11  }
 0x128   :  { %819 = shalt.err (!%p816_p0)
}
 0x129   :  { %521 = dma.vmem_to_hbm [thread:$0]  %s516_s3, 1024, %s927_s4, [#allocation4], %s838_s25, %s838_s25, %s839_s26  }
 0x12a   :  { %832 = dma.done.wait [#allocation4], 1024  }
 0x12b   :  { %833 = vsyncadd [#allocation4], 4294966272 }
 0x12c   :  { %525 = vsyncpa [#allocation3], 1 }
 0x12d   :  { %526 = vsyncpa [#allocation6], 1 }
 0x12e   :  { %527 = vsyncpa [#allocation4], 1 }

</bundles_post_ra>
